<compile_context>
chip_gen: v6e
topology: v6e:2x2x1
jax: 0.10.0
libtpu: 0.0.40
codegen_flags: <defaults>
</compile_context>

<pallas_src>
import functools

import numpy as np
import jax
import jax.numpy as jnp
from jax.experimental import pallas as pl
from jax.experimental.pallas import tpu as pltpu


# ----------------------------------------------------------------------------
# Per-generation configuration (VMEM limit / tile targets).
# ----------------------------------------------------------------------------
def _big_vmem_part() -> bool:
    """True on 128-MiB-VMEM TensorCores (v5e / v5p / v6e); False otherwise
    (v7x has 64 MiB per TC) or if the query fails."""
    try:
        kind = jax.devices()[0].device_kind.lower()
    except Exception:
        return False
    return ("v5" in kind) or ("v6" in kind)


if _big_vmem_part():
    # 128 MiB VMEM: 32 MiB bf16 weight blocks (64 MiB double-buffered).
    _MLP_VMEM_LIMIT = 96 * 1024 * 1024
    _TK_TARGET = 4096
    _TN_TARGET = 4096
    _POOL_BLOCK_CAP = 16 * 1024 * 1024
else:
    # 64 MiB VMEM (v7x) or unknown: 16 MiB weight blocks, 32 MiB double-buffered,
    # and >=2 N-tiles stay "parallel" so both TensorCores share the stream.
    _MLP_VMEM_LIMIT = 46 * 1024 * 1024
    _TK_TARGET = 4096
    _TN_TARGET = 2048
    _POOL_BLOCK_CAP = 8 * 1024 * 1024


# ----------------------------------------------------------------------------
# Adaptive average pooling (exact PyTorch bins) as two flat GEMMs.
# ----------------------------------------------------------------------------
def _adaptive_pool_matrix(in_size: int, out_size: int) -> np.ndarray:
    """(out_size, in_size) row-stochastic matrix reproducing torch's
    AdaptiveAvgPool bins: bin i covers [floor(i*in/out), ceil((i+1)*in/out))."""
    m = np.zeros((out_size, in_size), dtype=np.float32)
    for i in range(out_size):
        start = (i * in_size) // out_size
        end = -((-(i + 1) * in_size) // out_size)  # ceil((i+1)*in/out)
        m[i, start:end] = 1.0 / float(end - start)
    return m


def _pick_channel_block(C: int, bytes_per_channel: int, cap_bytes: int) -> int:
    """Channel slab per grid step.  The pooled-output block is (1, cblk, T*T),
    so cblk must be a multiple of 8 or equal to C (sublane constraint)."""
    cap = max(1, cap_bytes // max(1, bytes_per_channel))
    if C <= cap:
        return C
    for d in range(min(C, cap), 0, -1):
        if C % d == 0 and d % 8 == 0:
            return d
    return C  # no suitable divisor: take the whole channel axis (bigger DMA)


def _pool_kernel(x_ref, awt_ref, aht_ref, o_ref):
    # x: (1, cblk, H, W); awt: (W, T); aht: (H, T); o: (1, cblk, T*T)
    cblk, H, W = x_ref.shape[1], x_ref.shape[2], x_ref.shape[3]
    T = awt_ref.shape[1]
    # (cblk, H) merge is a free reshape when H % 8 == 0 (typical image sizes);
    # otherwise Mosaic inserts a relayout copy (correct, slower).
    x2 = x_ref[0].astype(jnp.float32).reshape(cblk * H, W)
    # Contraction over W as one big-M flat GEMM: (cblk*H, W) @ (W, T).
    t = jnp.dot(x2, awt_ref[...], preferred_element_type=jnp.float32)
    # Contraction over H as a second flat GEMM.  The swapaxes runs on the XLU
    # (separate slot from the MXU) and replaces the old broadcast(ah) +
    # per-channel batched tiny matmuls.
    yt = t.reshape(cblk, H, T).swapaxes(1, 2).reshape(cblk * T, H)
    out = jnp.dot(yt, aht_ref[...], preferred_element_type=jnp.float32)  # rows: (c, jw), cols: i
    out = out.reshape(cblk, T, T).swapaxes(1, 2)                         # -> (c, i, jw)
    o_ref[0] = out.reshape(cblk, T * T)                                  # lane-dense store


def adaptive_avg_pool2d_flat(x: jax.Array, out_size: int) -> jax.Array:
    """(B, C, H, W) -> (B, C, T*T); last dim is row-major (i, j) so a plain
    reshape reproduces nn.Flatten's ordering."""
    B, C, H, W = x.shape
    T = out_size
    aht = jnp.asarray(_adaptive_pool_matrix(H, T).T)   # (H, T)
    awt = jnp.asarray(_adaptive_pool_matrix(W, T).T)   # (W, T)
    cblk = _pick_channel_block(C, H * W * 4, _POOL_BLOCK_CAP)
    return pl.pallas_call(
        _pool_kernel,
        out_shape=jax.ShapeDtypeStruct((B, C, T * T), jnp.float32),
        grid=(B, C // cblk),
        in_specs=[
            pl.BlockSpec((1, cblk, H, W), lambda b, cb: (b, cb, 0, 0)),
            pl.BlockSpec((W, T), lambda b, cb: (0, 0)),
            pl.BlockSpec((H, T), lambda b, cb: (0, 0)),
        ],
        out_specs=pl.BlockSpec((1, cblk, T * T), lambda b, cb: (b, cb, 0)),
        compiler_params=pltpu.CompilerParams(
            dimension_semantics=("parallel", "parallel"),
            vmem_limit_bytes=_MLP_VMEM_LIMIT),
    )(x, awt, aht)


# ----------------------------------------------------------------------------
# Tiled Linear (+ optional ReLU): relu?(x @ W + b).
# bf16 activations/weights streamed from HBM, f32 MXU accumulation directly in
# the VMEM-resident output block (no scratch).
# ----------------------------------------------------------------------------
def _linear_kernel(x_ref, w_ref, b_ref, o_ref, *, apply_relu):
    k = pl.program_id(1)  # reduction axis (last)

    @pl.when(k == 0)
    def _init():
        o_ref[...] = jnp.zeros_like(o_ref)

    o_ref[...] += jnp.dot(x_ref[...], w_ref[...],
                          preferred_element_type=jnp.float32)

    @pl.when(k == pl.num_programs(1) - 1)
    def _finalize():
        r = o_ref[...] + b_ref[...]
        if apply_relu:
            r = jnp.maximum(r, 0.0)
        o_ref[...] = r


def _pick_tile(dim: int, target: int) -> int:
    """Largest divisor of `dim` <= target; prefers multiples of 128 (lane
    alignment), then multiples of 8.  Full dim if dim <= target."""
    if dim <= target:
        return dim
    best_any = dim
    best_8 = None
    for cand in range(target, 0, -1):
        if dim % cand == 0:
            if cand % 128 == 0:
                return cand
            if best_8 is None and cand % 8 == 0:
                best_8 = cand
            if best_any == dim:
                best_any = cand
    return best_8 if best_8 is not None else best_any


def pallas_linear(x, w, b, *, apply_relu):
    """out = relu?(x @ w + b).  x: (M, K) bf16, w: (K, N) bf16, b: (1, N) f32."""
    M, K = x.shape
    Kw, N = w.shape
    assert K == Kw and b.shape == (1, N)
    tk = _pick_tile(K, _TK_TARGET)
    tn = _pick_tile(N, _TN_TARGET)
    kernel = functools.partial(_linear_kernel, apply_relu=apply_relu)
    return pl.pallas_call(
        kernel,
        out_shape=jax.ShapeDtypeStruct((M, N), jnp.float32),
        grid=(N // tn, K // tk),                          # reduction axis last
        in_specs=[
            pl.BlockSpec((M, tk), lambda j, k: (0, k)),
            pl.BlockSpec((tk, tn), lambda j, k: (k, j)),
            pl.BlockSpec((1, tn), lambda j, k: (0, j)),
        ],
        out_specs=pl.BlockSpec((M, tn), lambda j, k: (0, j)),
        compiler_params=pltpu.CompilerParams(
            dimension_semantics=("parallel", "arbitrary"),
            vmem_limit_bytes=_MLP_VMEM_LIMIT),
    )(x, w, b)


# ----------------------------------------------------------------------------
# ExpertToLLM module (JAX/Pallas port)
# ----------------------------------------------------------------------------
class ExpertToLLM:
    def __init__(self, in_channels=64, num_new_tokens=32, out_features=2048,
                 key=jax.random.PRNGKey(0)):
        self.num_tokens = num_new_tokens
        self.out_dim = out_features
        input_dim = in_channels * num_new_tokens * num_new_tokens
        hidden_dim = max(1, input_dim // 16)
        self.input_dim = input_dim
        self.hidden_dim = hidden_dim

        k1, k2, k3, k4 = jax.random.split(key, 4)
        bnd1 = 1.0 / np.sqrt(input_dim)
        bnd2 = 1.0 / np.sqrt(hidden_dim)
        # Weights stored transposed (in, out), bf16: the MLP is HBM-bandwidth
        # bound on weight traffic at tiny batch; bf16 halves bytes moved and is
        # MXU-native (f32 accumulation in-kernel).
        self.w1 = jax.random.uniform(k1, (input_dim, hidden_dim), jnp.float32,
                                     -bnd1, bnd1).astype(jnp.bfloat16)
        self.b1 = jax.random.uniform(k2, (1, hidden_dim), jnp.float32, -bnd1, bnd1)
        self.w2 = jax.random.uniform(k3, (hidden_dim, num_new_tokens * out_features),
                                     jnp.float32, -bnd2, bnd2).astype(jnp.bfloat16)
        self.b2 = jax.random.uniform(k4, (1, num_new_tokens * out_features),
                                     jnp.float32, -bnd2, bnd2)

    def __call__(self, x: jax.Array) -> jax.Array:
        # x: (B, C, H, W) NCHW float32
        B = x.shape[0]
        pooled = adaptive_avg_pool2d_flat(x, self.num_tokens)    # (B, C, T*T)
        flat = pooled.reshape(B, self.input_dim)                 # metadata reshape
        # Pad batch to a full sublane (8 rows); padded rows sliced off at the end.
        Mp = max(8, -(-B // 8) * 8)
        if Mp != B:
            flat = jnp.pad(flat, ((0, Mp - B), (0, 0)))
        # Cast activations to bf16 ONCE here (not per grid step inside the kernel).
        flat = flat.astype(jnp.bfloat16)
        h = pallas_linear(flat, self.w1, self.b1, apply_relu=True)      # f32
        h = h.astype(jnp.bfloat16)
        out = pallas_linear(h, self.w2, self.b2, apply_relu=False)      # f32
        out = out[:B]
        return out.reshape(B, self.num_tokens, self.out_dim)

    # Pure-JAX reference (same math, models the same bf16 activation/weight
    # quantization as the kernel path) for the sanity check.
    def reference(self, x: jax.Array) -> jax.Array:
        B, C, H, W = x.shape
        T = self.num_tokens
        ah = jnp.asarray(_adaptive_pool_matrix(H, T))
        aw = jnp.asarray(_adaptive_pool_matrix(W, T))
        pooled = jnp.einsum('th,bchw,sw->bcts', ah, x.astype(jnp.float32), aw)
        flat = pooled.reshape(B, self.input_dim)
        flat = flat.astype(jnp.bfloat16).astype(jnp.float32)
        h = jnp.maximum(flat @ self.w1.astype(jnp.float32) + self.b1, 0.0)
        h = h.astype(jnp.bfloat16).astype(jnp.float32)
        out = h @ self.w2.astype(jnp.float32) + self.b2
        return out.reshape(B, T, self.out_dim)


if __name__ == "__main__":
    # Small shapes consistent with the module's forward:
    # batch=2, in_channels=4, image_size=16, num_new_tokens=8, out_features=32
    B, C, IMG, T, OUT = 2, 4, 16, 8, 32

    key = jax.random.PRNGKey(0)
    kx, kp = jax.random.split(key)
    x = jax.random.normal(kx, (B, C, IMG, IMG), dtype=jnp.float32)

    model = ExpertToLLM(in_channels=C, num_new_tokens=T, out_features=OUT, key=kp)

    y = jax.block_until_ready(model(x))
    assert y.shape == (B, T, OUT), y.shape

    y_ref = jax.block_until_ready(model.reference(x))
    np.testing.assert_allclose(np.asarray(y), np.asarray(y_ref),
                               rtol=2e-2, atol=2e-2)

    print("KERNEL_OK")
</pallas_src>

<mosaic_0001>
module attributes {stable_mosaic.version = 11 : i64} {
  func.func @_pool_kernel(%arg0: i32, %arg1: i32, %arg2: memref<1x4x16x16xf32, #tpu.memory_space<vmem>>, %arg3: memref<16x8xf32, #tpu.memory_space<vmem>>, %arg4: memref<16x8xf32, #tpu.memory_space<vmem>>, %arg5: memref<1x4x64xf32, #tpu.memory_space<vmem>>) attributes {dimension_semantics = [#tpu.dimension_semantics<parallel>, #tpu.dimension_semantics<parallel>], iteration_bounds = array<i64: 2, 1>, scalar_prefetch = 0 : i64, scratch_operands = 0 : i64, tpu.core_type = #tpu.core_type<tc>, window_params = [{transform_indices = @transform_0, window_bounds = array<i64: 1, 4, 16, 16>}, {pipeline_mode = #tpu.pipeline_mode<synchronous>, transform_indices = @transform_1, window_bounds = array<i64: 16, 8>}, {pipeline_mode = #tpu.pipeline_mode<synchronous>, transform_indices = @transform_2, window_bounds = array<i64: 16, 8>}, {transform_indices = @transform_3, window_bounds = array<i64: 1, 4, 64>}]} {
    %c0 = arith.constant 0 : index
    %c0_0 = arith.constant 0 : index
    %c0_1 = arith.constant 0 : index
    %c0_2 = arith.constant 0 : index
    %0 = vector.load %arg2[%c0, %c0_0, %c0_1, %c0_2] : memref<1x4x16x16xf32, #tpu.memory_space<vmem>>, vector<1x4x16x16xf32>
    %1 = vector.shape_cast %0 : vector<1x4x16x16xf32> to vector<4x16x16xf32>
    %2 = vector.shape_cast %1 : vector<4x16x16xf32> to vector<64x16xf32>
    %c0_3 = arith.constant 0 : index
    %c0_4 = arith.constant 0 : index
    %3 = vector.load %arg3[%c0_3, %c0_4] : memref<16x8xf32, #tpu.memory_space<vmem>>, vector<16x8xf32>
    %cst = arith.constant dense<0.000000e+00> : vector<64x8xf32>
    %4 = tpu.matmul %2, %3, %cst {dimension_numbers = #tpu.dot_dimension_numbers<[1], [0], [0], [1], [0, 0, 1, 1], [], []>} : vector<64x16xf32>, vector<16x8xf32>, vector<64x8xf32> -> vector<64x8xf32>
    %5 = vector.shape_cast %4 : vector<64x8xf32> to vector<4x16x8xf32>
    %6 = tpu.transpose %5, [0, 2, 1] : vector<4x16x8xf32> -> vector<4x8x16xf32>
    %7 = vector.shape_cast %6 : vector<4x8x16xf32> to vector<32x16xf32>
    %c0_5 = arith.constant 0 : index
    %c0_6 = arith.constant 0 : index
    %8 = vector.load %arg4[%c0_5, %c0_6] : memref<16x8xf32, #tpu.memory_space<vmem>>, vector<16x8xf32>
    %cst_7 = arith.constant dense<0.000000e+00> : vector<32x8xf32>
    %9 = tpu.matmul %7, %8, %cst_7 {dimension_numbers = #tpu.dot_dimension_numbers<[1], [0], [0], [1], [0, 0, 1, 1], [], []>} : vector<32x16xf32>, vector<16x8xf32>, vector<32x8xf32> -> vector<32x8xf32>
    %10 = vector.shape_cast %9 : vector<32x8xf32> to vector<4x8x8xf32>
    %11 = tpu.transpose %10, [0, 2, 1] : vector<4x8x8xf32> -> vector<4x8x8xf32>
    %12 = vector.shape_cast %11 : vector<4x8x8xf32> to vector<4x64xf32>
    %c0_8 = arith.constant 0 : index
    %c0_9 = arith.constant 0 : index
    %c0_10 = arith.constant 0 : index
    %13 = vector.load %arg5[%c0_8, %c0_9, %c0_10] : memref<1x4x64xf32, #tpu.memory_space<vmem>>, vector<1x4x64xf32>
    %14 = vector.shape_cast %13 : vector<1x4x64xf32> to vector<4x64xf32>
    %15 = vector.shape_cast %12 : vector<4x64xf32> to vector<1x4x64xf32>
    tpu.vector_store %arg5[%c0_8, %c0_9, %c0_10], %15 {strides = array<i32>} : memref<1x4x64xf32, #tpu.memory_space<vmem>>, vector<1x4x64xf32>,
    return
  }
  func.func @transform_0(%arg0: i32, %arg1: i32) -> (i32, i32, i32, i32) {
    %c0_i32 = arith.constant 0 : i32
    %c0_i32_0 = arith.constant 0 : i32
    %c0_i32_1 = arith.constant 0 : i32
    return %arg0, %arg1, %c0_i32, %c0_i32_0 : i32, i32, i32, i32
  }
  func.func @transform_1(%arg0: i32, %arg1: i32) -> (i32, i32) {
    %c0_i32 = arith.constant 0 : i32
    %c0_i32_0 = arith.constant 0 : i32
    %c0_i32_1 = arith.constant 0 : i32
    return %c0_i32, %c0_i32_0 : i32, i32
  }
  func.func @transform_2(%arg0: i32, %arg1: i32) -> (i32, i32) {
    %c0_i32 = arith.constant 0 : i32
    %c0_i32_0 = arith.constant 0 : i32
    %c0_i32_1 = arith.constant 0 : i32
    return %c0_i32, %c0_i32_0 : i32, i32
  }
  func.func @transform_3(%arg0: i32, %arg1: i32) -> (i32, i32, i32) {
    %c0_i32 = arith.constant 0 : i32
    %c0_i32_0 = arith.constant 0 : i32
    return %arg0, %arg1, %c0_i32 : i32, i32, i32
  }
}

</mosaic_0001>

<bundles_post_ra>
// kernel: tpu_custom_call.1
= control target key start
LH: loop header
LB: loop body
LE: loop exit
PB: predicated region body
PF: predicated region fallthrough
CT: control target
= control target key end

     0   :  { %8 = vsyncpa [#allocation3], 0  ;;  %s1367_s0 = inlined_call_operand.hbm [shape: f32[2,4,16,16], index: 0, kind: input, shape index: {}]   ;;  %s1368_s1 = inlined_call_operand.vmem [shape: f32[16,8], index: 1, kind: input, shape index: {}]   ;;  %s1369_s2 = inlined_call_operand.vmem [shape: f32[16,8], index: 2, kind: input, shape index: {}]   ;;  %s1370_s3 = inlined_call_operand.hbm [shape: f32[2,4,64], index: 3, kind: output, shape index: {}]  }
   0x1   :  { %10 = vsyncpa [#allocation3 + $0x1], 0 }
   0x2   :  { %11 = vsyncpa [#allocation4], 0 }
   0x3   :  { %13 = vsyncpa [#allocation4 + $0x1], 0  ;;  %s1203_s12 = smov 0   ;;  %s1205_s13 = smov 0  }
   0x4   :  { %s1207_s14 = smov 0   ;;  %s1209_s15 = smov 0  }
   0x5   :  { %s1211_s16 = smov 0   ;;  %s1213_s17 = smov 0  }
   0x6 LB: > { %s912_s18 = sadd.s32 4294967295, %s1167_s17   ;;  %s913_s19 = sadd.s32 4294967294, %s1167_s17   ;;  %s1167_s17 = sphi %s1213_s17, %s19_s17   ;;  %s1163_s16 = sphi %s1211_s16, %s1381_s16   ;;  %s1159_s15 = sphi %s1209_s15, %s1380_s15   ;;  %s1155_s14 = sphi %s1207_s14, %s1379_s14   ;;  %s1151_s13 = sphi %s1205_s13, %s1378_s13   ;;  %s1147_s12 = sphi %s1203_s12, %s1377_s12  }
   0x7   : > { %s31_s20 = sadd.s32 1, %s1163_s16  ;;  %s40_s21 = sadd.s32 1, %s1155_s14 }
   0x8   : > { %p33_p0 = scmp.ge.s32.totalorder %s31_s20, 2  ;;  %p47_p1 = scmp.ne.s32.totalorder %s1155_s14, %s1151_s13 }
   0x9   : > { %p48_p2 = scmp.eq.s32.totalorder %s1167_s17, 0  ;;  %p53_p3 = scmp.ne.s32.totalorder %s1151_s13, %s1147_s12 }
   0xa   : > { %s1383_s20 = smov (%p33_p0, %s31_s20), 0  ;;  %p54_p5 = scmp.eq.s32.totalorder %s912_s18, 0 }
   0xb   : > { %p1244_p4 = por %p48_p2, %p47_p1  ;;  %s35_s23 = ssub.s32 %s1163_s16, %s1383_s20 }
   0xc   : > { %p121_p6 = scmp.eq.s32.totalorder %s912_s18, 1  ;;  %p38_p7 = scmp.eq.s32.totalorder %s35_s23, 0 }
   0xd   : > { %p1250_p8 = por %p54_p5, %p53_p3  ;;  %p127_p10 = scmp.eq.s32.totalorder %s913_s19, 1 }
   0xe   : > { %p1254_p9 = por %p121_p6, %p47_p1  ;;  %p997_p13 = scmp.lt.s32.totalorder %s1167_s17, 2 }
   0xf   : > { %s1259_s26 = scalar_select %p38_p7, %s1155_s14, %s40_s21  }
  0x10   : > { %p1261_p11 = por %p127_p10, %p53_p3  ;;  %s153_s28 = sand.u32 1, %s1155_s14  }
  0x11   : > { %s916_s29 = sshll.u32 %s153_s28, 6  ;;  %s938_s30 = sshll.u32 %s1163_s16, 10 }
  0x12   : > { %s166_s6 = scalar_lea.hbm %s1367_s0, %s938_s30  ;;  %s157_s7 = scalar_lea.vmem [#allocation2], %s916_s29 }
  0x13   : > { %s167_s8 = sshll.u32 %s157_s7, 4  ;;  %p1274_p0 = pnand %p997_p13, %p1244_p4  ;;  %s168_s8 = int_to_ptr.vmem [resolvable:$true] %s167_s8 }
  0x14   : > { %p919_p1 = scmp.ge.s32.totalorder %s1167_s17, 1  ;;  %s154_s10 = scalar_lea.sflag [#allocation3], %s153_s28 }
  0x15   : > { %p1061_p2 = pneg %p1274_p0  ;;  %s1072_s11 = scalar_lea.vmem %s168_s8, 1024 }
  0x16   : > { %p1073_p3 = scmp.ne.s32.totalorder %s168_s8, %s1072_s11  ;;  %s1169_s18 = smov [#allocation2]  }
  0x17   : > { %s1077_s19 = sshll.u32 %s1169_s18, 4  ;;  %s1078_s19 = int_to_ptr.vmem [resolvable:$false] %s1077_s19 }
  0x18   : > { %p1075_p5 = pnand %p1073_p3, %p1061_p2  ;;  %s1079_s21 = scalar_lea.vmem %s1078_s19, 2048 }
  0x19   : > { %p1080_p7 = scmp.lt.s32.totalorder %s168_s8, %s1078_s19  ;;  %p1081_p10 = scmp.lt.s32.totalorder %s1079_s21, %s1072_s11 }
  0x1a   : > { %p1076_p6 = pneg %p1075_p5 }
  0x1b   : > { %p1082_p12 = por %p1081_p10, %p1080_p7 }
  0x1d   : > { %p1083_p4 = pnand %p1082_p12, %p1076_p6 }
  0x1f   : > { %1086 = shalt.err (!%p1083_p4)
}
  0x20   : > { %s1170_s22 = smov 128   ;;  %s1171_s23 = smov 8  }
  0x21   : > { %992 = dma.hbm_to_vmem [thread:$0]  (!%p1274_p0), %s166_s6, 1024, %s168_s8, %s154_s10, %s1170_s22, %s1170_s22, %s1171_s23  }
  0x22   : > { %p175_p13 = scmp.lt.s32.totalorder %s1167_s17, 3 }
  0x24   : > { %p176_p2 = pnand %p919_p1, %p175_p13 }
  0x25   : > { %s1287_s28 = sand.u32 (!%p176_p2), 1, %s1151_s13  }
  0x26   : > { %179 = sbr.rel (%p176_p2) target bundleno = 854 (0x356), region = 32  ;;  %s920_s29 = sshll.u32 (!%p176_p2), %s1287_s28, 6 }
  0x27   : > { %s182_s30 = scalar_lea.sflag (!%p176_p2), [#allocation3], %s1287_s28  ;;  %s185_s4 = scalar_lea.vmem (!%p176_p2), [#allocation2], %s920_s29 }
  0x2b   : > { %1138 = dma.done.wait (%p1250_p8), %s182_s30, 1024  }
  0x2c   : > { %1140 = vsyncadd (%p1250_p8), %s182_s30, 4294966272  ;;  %vm219_vm0 = vcmask 130048   ;;  %v218_v0 = vld [vmem:[%s1368_s1 + $0x8] sm:$0xff]  ;;  %v217_v1 = vld [vmem:[%s1368_s1] sm:$0xff]  ;;  %v1172_v28 = vmov 1983009808   ;;  %v709_v30 = vlaneseq }
  0x2d   : > { %v209_v2 = vld [vmem:[%s185_s4] sm:$0xff]  ;;  %955 = vmatprep.subr.mxu0 %v218_v0  ;;  %v210_v3 = vld [vmem:[%s185_s4 + $0x8] sm:$0xff]  ;;  %981 = vmatprep.subr.mxu1 %v218_v0  ;;  %v211_v4 = vld [vmem:[%s185_s4 + $0x10] sm:$0xff]  ;;  %v707_v29 = vunpack.c.l.s4 %v1172_v28  ;;  %v1173_v35 = vmov 1934713408   ;;  %s1174_s18 = smov 16  }
  0x2e   : > { %959 = vmatprep.mubr.msk.f32.mxu0 %vm219_vm0, %v209_v2  ;;  %956 = vmatpush3.msra.mxu0 %v218_v0  ;;  %v215_v5 = vld [vmem:[%s185_s4 + $0x30] sm:$0xff]  ;;  %v216_v6 = vld [vmem:[%s185_s4 + $0x38] sm:$0xff]  ;;  %v213_v8 = vld [vmem:[%s185_s4 + $0x20] sm:$0xff]  ;;  %v710_v34 = vshrl.u32 %v709_v30, 7  ;;  %v739_v36 = vunpack.c.l.s4 %v1173_v35  ;;  %v1175_v56 = vmov 0.0   ;;  %s1176_s19 = smov 8  }
  0x2f   : > { %957 = vmatprep.subr.mxu0 %v217_v1  ;;  %983 = vmatpush3.msra.mxu1 %v218_v0  ;;  %v212_v7 = vld [vmem:[%s185_s4 + $0x18] sm:$0xff]  ;;  %v214_v9 = vld [vmem:[%s185_s4 + $0x28] sm:$0xff]  ;;  %v477_v11 = vld [vmem:[%s1369_s2] sm:$0xff]  ;;  %v708_v33 = vunpack.c.0.s8 %v707_v29  ;;  %s1177_s21 = smov 32   ;;  %s1178_s22 = smov 48   ;;  %vm800_vm1 = vcmask 64512  }
  0x30   : > { %958 = vmatpush3.msra.mxu0 %v217_v1  ;;  %982 = vmatprep.subr.mxu1 %v217_v1  ;;  %v478_v10 = vld [vmem:[%s1369_s2 + $0x8] sm:$0xff]  ;;  %v740_v40 = vunpack.c.0.s8 %v739_v36  ;;  %s1179_s23 = smov 24   ;;  %s1180_s29 = smov 40   ;;  %vm803_vm2 = vcmask 195584   ;;  %vm805_vm3 = vcmask 261120   ;;  %vm807_vm4 = vcmask 326656  }
  0x31   : > { %960 = vmatmul.mubr.msk.f32.vlgmr.msra.gmra.mxu0 %vm219_vm0, %v210_v3  ;;  %984 = vmatpush3.msra.mxu1 %v217_v1  ;;  %v711_v38 = vsub.s32 %v708_v33, %v710_v34  ;;  %s1181_s30 = smov 56   ;;  %s921_s4 = sshll.u32 %s1287_s28, 2  ;;  %vm809_vm5 = vcmask 392192   ;;  %vm811_vm6 = vcmask 457728   ;;  %vm813_vm7 = vcmask 519168  }
  0x32   : > { %962 = vmatprep.mubr.msk.f32.mxu0 %vm219_vm0, %v211_v4  ;;  %968 = vmatprep.mubr.msk.f32.mxu1 %vm219_vm0, %v215_v5  ;;  %v743_v48 = vsub.s32 %v740_v40, %v710_v34  ;;  %s935_s5 = sshll.u32 %s1159_s15, 6  ;;  %s207_s6 = scalar_lea.vmem [#allocation5], %s921_s4 }
  0x33   : > { %969 = vmatmul.mubr.msk.f32.vlgmr.msra.gmra.mxu1 %vm219_vm0, %v216_v6  ;;  %971 = vmatprep.subr.mxu1 %v478_v10  ;;  %s830_s7 = sshll.u32 %s207_s6, 4  ;;  %s1325_s9 = scalar_lea.hbm %s1370_s3, %s935_s5  ;;  %s831_s7 = int_to_ptr.vmem [resolvable:$true] %s830_s7 }
  0x34   : > { %972 = vmatpush3.msra.mxu1 %v478_v10  ;;  %s816_s10 = scalar_lea.sflag [#allocation4], %s1287_s28  ;;  %s1087_s11 = scalar_lea.vmem %s831_s7, 64 }
  0x35   : > { %963 = vmatmul.mubr.msk.f32.gmra.mxu0 %vm219_vm0, %v212_v7  ;;  %973 = vmatprep.subr.mxu1 %v477_v11  ;;  %p1088_p8 = scmp.ne.s32.totalorder %s831_s7, %s1087_s11  ;;  %s1182_s15 = smov [#allocation5]  }
  0x36   : > { %965 = vmatprep.mubr.msk.f32.mxu0 %vm219_vm0, %v213_v8  ;;  %974 = vmatpush3.msra.mxu1 %v477_v11 }
  0x37   : > { %p1089_p12 = pnand %p1088_p8, %p1254_p9 }
  0x39   : > { %966 = vmatmul.mubr.msk.f32.gmra.mxu0 %vm219_vm0, %v214_v9  ;;  %p1090_p0 = pneg %p1089_p12 }
  0xf1   : > { %v961_v12 = vpop.f32.mrf.mxu0 }
  0xf3   : > { %v310_v13 = vpop.f32.mrf.mxu0  ;;  %v970_v18 = vpop.f32.mrf.mxu1 }
  0xf4   : > { %349 = vxpose.xlu0.b32.start [1/2] (short) (narrow) %v310_v13, 8 }
  0xf5   : > { %v964_v14 = vpop.f32.mrf.mxu0  ;;  %v340_v19 = vpop.f32.mrf.mxu1 }
  0xf7   : > { %v320_v15 = vpop.f32.mrf.mxu0 }
  0xf8   : > { %350 = vxpose.xlu0.b32.end [2/2] (short) (narrow) %v961_v12, 8  ;;  %381 = vxpose.xlu1.b32.start [1/2] (short) (narrow) %v320_v15, 8 }
  0xf9   : > { %v967_v16 = vpop.f32.mrf.mxu0 }
  0xfb   : > { %v330_v17 = vpop.f32.mrf.mxu0 }
  0xfc   : > { %382 = vxpose.xlu1.b32.end [2/2] (short) (narrow) %v964_v14, 8  ;;  %413 = vxpose.xlu0.b32.start [1/2] (short) (narrow) %v330_v17, 8 }
 0x100   : > { %445 = vxpose.xlu1.b32.start [1/2] (short) (narrow) %v340_v19, 8  ;;  %414 = vxpose.xlu0.b32.end [2/2] (short) (narrow) %v967_v16, 8 }
 0x104   : > { %446 = vxpose.xlu1.b32.end [2/2] (short) (narrow) %v970_v18, 8 }
 0x170   : > { %v365_v20 = vpop.trf.xlu0 }
 0x171   : > { %975 = vmatprep.mubr.msk.f32.mxu1 %vm219_vm0, %v365_v20 }
 0x174   : > { %v397_v21 = vpop.trf.xlu1 }
 0x175   : > { %976 = vmatmul.mubr.msk.f32.vlgmr.msra.gmra.mxu1 %vm219_vm0, %v397_v21 }
 0x178   : > { %v429_v22 = vpop.trf.xlu0 }
 0x179   : > { %978 = vmatprep.mubr.msk.f32.mxu1 %vm219_vm0, %v429_v22 }
 0x17c   : > { %v461_v23 = vpop.trf.xlu1 }
 0x17d   : > { %979 = vmatmul.mubr.msk.f32.gmra.mxu1 %vm219_vm0, %v461_v23 }
 0x235   : > { %v977_v24 = vpop.f32.mrf.mxu1 }
 0x236   : > { %608 = vxpose.xlu1.b32.start.end [1/1] (short) (narrow) %v977_v24, 8 }
 0x237   : > { %v557_v25 = vpop.f32.mrf.mxu1 }
 0x238   : > { %576 = vxpose.xlu0.b32.start.end [1/1] (short) (narrow) %v557_v25, 8 }
 0x23d   : > { %v980_v26 = vpop.f32.mrf.mxu1 }
 0x23e   : > { %672 = vxpose.xlu1.b32.start.end [1/1] (short) (narrow) %v980_v26, 8 }
 0x23f   : > { %v567_v27 = vpop.f32.mrf.mxu1 }
 0x240   : > { %640 = vxpose.xlu0.b32.start.end [1/1] (short) (narrow) %v567_v27, 8 }
 0x2b2   : > { %v624_v31 = vpop.trf.xlu1 }
 0x2b4   : > { %v592_v32 = vpop.trf.xlu0 }
 0x2ba   : > { %v688_v37 = vpop.trf.xlu1 }
 0x2bb   : > { %v720_v39 = vcombine.low %v624_v31, %v688_v37  ;;  %v721_v42 = vcombine.high %v624_v31, %v688_v37 }
 0x2bc   : > { %v656_v41 = vpop.trf.xlu0 }
 0x2bd   : > { %v704_v43 = vcombine.low %v592_v32, %v656_v41  ;;  %v705_v44 = vcombine.high %v592_v32, %v656_v41  ;;  %v728_v45 = vrot.slane %v720_v39, %v711_v38  ;;  %v735_v49 = vrot.slane %v721_v42, %v711_v38 }
 0x2bf   : > { %v712_v46 = vrot.slane %v704_v43, %v711_v38  ;;  %v719_v47 = vrot.slane %v705_v44, %v711_v38 }
 0x2c1   : > { %v736_v50 = vcombine.low %v712_v46, %v728_v45  ;;  %v737_v51 = vcombine.high %v712_v46, %v728_v45  ;;  %v752_v52 = vcombine.low %v719_v47, %v735_v49  ;;  %v753_v55 = vcombine.high %v719_v47, %v735_v49 }
 0x2c3   : > { %v751_v53 = vrot.slane %v737_v51, %v743_v48  ;;  %v744_v54 = vrot.slane %v736_v50, %v743_v48  ;;  %v760_v58 = vrot.slane %v752_v52, %v743_v48  ;;  %v767_v59 = vrot.slane %v753_v55, %v743_v48 }
 0x2c5   : > { %777 = vrot.lane.b32.xlu1 %v751_v53, %s1174_s18  ;;  %v768_v57 = vcombine.high %v744_v54, %v1175_v56  ;;  %v769_v60 = vcombine.high %v751_v53, %v1175_v56  ;;  %v770_v61 = vcombine.high %v760_v58, %v1175_v56  ;;  %v771_v62 = vcombine.high %v767_v59, %v1175_v56  ;;  %s1091_s18 = sshll.u32 %s1182_s15, 4  ;;  %s1092_s18 = int_to_ptr.vmem [resolvable:$false] %s1091_s18 }
 0x2c6   : > { %p1094_p1 = scmp.lt.s32.totalorder %s831_s7, %s1092_s18 }
 0x2c7   : > { %773 = vrot.lane.b32.xlu0 %v768_v57, %s1176_s19  ;;  %s1093_s19 = scalar_lea.vmem %s1092_s18, 128 }
 0x2c8   : > { %p1095_p3 = scmp.lt.s32.totalorder %s1093_s19, %s1087_s11 }
 0x2c9   : > { %785 = vrot.lane.b32.xlu1 %v760_v58, %s1177_s21 }
 0x2ca   : > { %p1096_p5 = por %p1095_p3, %p1094_p1 }
 0x2cb   : > { %793 = vrot.lane.b32.xlu0 %v767_v59, %s1178_s22 }
 0x2cc   : > { %p1097_p6 = pnand %p1096_p5, %p1090_p0 }
 0x2cd   : > { %781 = vrot.lane.b32.xlu1 %v769_v60, %s1179_s23 }
 0x2d1   : > { %789 = vrot.lane.b32.xlu1 %v770_v61, %s1180_s29 }
 0x2d5   : > { %797 = vrot.lane.b32.xlu1 %v771_v62, %s1181_s30 }
 0x337   : > { %v778_v63 = vpop.permute.xlu1 %777 }
 0x339   : > { %v774_v0 = vpop.permute.xlu0 %773 }
 0x33a   : > { %v801_v2 = vsel %vm800_vm1, %v744_v54, %v774_v0 }
 0x33b   : > { %v786_v1 = vpop.permute.xlu1 %785  ;;  %v802_v4 = vsel %vm219_vm0, %v801_v2, %v778_v63 }
 0x33d   : > { %v794_v9 = vpop.permute.xlu0 %793 }
 0x33f   : > { %v782_v3 = vpop.permute.xlu1 %781 }
 0x340   : > { %v804_v5 = vsel %vm803_vm2, %v802_v4, %v782_v3 }
 0x341   : > { %v806_v7 = vsel %vm805_vm3, %v804_v5, %v786_v1 }
 0x343   : > { %v790_v6 = vpop.permute.xlu1 %789 }
 0x344   : > { %v808_v8 = vsel %vm807_vm4, %v806_v7, %v790_v6 }
 0x345   : > { %v810_v11 = vsel %vm809_vm5, %v808_v8, %v794_v9 }
 0x347   : > { %v798_v10 = vpop.permute.xlu1 %797 }
 0x348   : > { %v812_v12 = vsel %vm811_vm6, %v810_v11, %v798_v10 }
 0x349   : > { %814 = vst.msk [vmem:[%s207_s6] sm:$0xf] %vm813_vm7, %v812_v12 }
 0x34a   : > { %1100 = shalt.err (!%p1097_p6)
}
 0x34b   : > { %s1101_s21 = scalar_lea.hbm %s1325_s9, 64  ;;  %s1105_s23 = scalar_lea.hbm %s1370_s3, 128 }
 0x34c   : > { %p1102_p7 = scmp.ne.s32.totalorder %s1325_s9, %s1101_s21  ;;  %p1106_p13 = scmp.lt.s32.totalorder %s1325_s9, %s1370_s3 }
 0x34d   : > { %p1107_p2 = scmp.lt.s32.totalorder %s1105_s23, %s1101_s21 }
 0x34e   : > { %p1103_p10 = pnand %p1102_p7, %p1254_p9 }
 0x34f   : > { %p1108_p8 = por %p1107_p2, %p1106_p13 }
 0x350   : > { %p1104_p4 = pneg %p1103_p10 }
 0x352   : > { %p1109_p12 = pnand %p1108_p8, %p1104_p4 }
 0x354   : > { %1112 = shalt.err (!%p1109_p12)
}
 0x355   : > { %987 = dma.vmem_to_hbm [thread:$0]  (%p1254_p9), %s831_s7, 64, %s1325_s9, %s816_s10  }
 0x356 PF: > { %s842_s4 = sand.u32 1, %s1147_s12   ;;  %p1376_p0 = scmp.ge.s32.totalorder %s1167_s17, 2 }
 0x357   : > { %s843_s5 = scalar_lea.sflag [#allocation4], %s842_s4 }
 0x358   : > { %p994_p1 = pnand %p1376_p0, %p1261_p11 }
 0x35a   : > { %p995_p3 = pneg %p994_p1 }
 0x35c   : > { %1142 = dma.done.wait (%p995_p3), %s843_s5, 64  }
 0x35d   : > { %1144 = vsyncadd (%p995_p3), %s843_s5, 4294967232  ;;  %s19_s17 = sadd.s32 1, %s1167_s17   ;;  %s1377_s12 = smov %s1151_s13 }
 0x35e   : > { %p16_p5 = scmp.ge.s32.totalorder %s19_s17, 4   ;;  %s1378_s13 = smov %s1155_s14 }
 0x35f   : > { %s1379_s14 = smov %s1259_s26  ;;  %s1380_s15 = smov %s1163_s16 }
 0x360   : > { %s1381_s16 = smov %s1383_s20  ;;  %18 = sbr.rel (!%p16_p5) target bundleno = 6 (0x6), region = 77 }
 0x365   :  { %848 = vsyncpa [#allocation3], 1 }
 0x366   :  { %850 = vsyncpa [#allocation3 + $0x1], 1 }
 0x367   :  { %851 = vsyncpa [#allocation4], 1 }
 0x368   :  { %853 = vsyncpa [#allocation4 + $0x1], 1 }

</bundles_post_ra>
